<compile_context>
chip_gen: v7x
topology: tpu7x:2x2x1
jax: 0.10.0
libtpu: 0.0.40
codegen_flags: <defaults>
</compile_context>

<pallas_src>
import functools

import jax
import jax.numpy as jnp
from jax import lax
from jax.experimental import pallas as pl
from jax.experimental.pallas import tpu as pltpu

_DEFAULT_TILE_BYTES = 2 * 1024 * 1024   # ~2 MiB per streamed tensor per step


def _bce_with_logits(x, y):
    """Numerically stable BCE-with-logits (f32 elementwise), PyTorch's form."""
    return jnp.maximum(x, 0.0) - x * y + jnp.log1p(jnp.exp(-jnp.abs(x)))


def _bce_sum_jnp(x, y, m=None):
    """Plain-jnp BCE-with-logits sum (ragged tails / degenerate tiny inputs)."""
    x = x.astype(jnp.float32)
    y = y.astype(jnp.float32)
    if m is not None:
        m = m.astype(jnp.float32)
        x = x * m
        y = y * m
    return jnp.sum(_bce_with_logits(x, y))


def _bce_accum_kernel(*refs, num_tiles, tiles_per_chunk, tile_rows, lanes,
                      valid_rows_last, has_overshoot, with_mask):
    """Accumulate per-element BCE losses into the resident output tile."""
    if with_mask:
        x_ref, y_ref, m_ref, out_ref = refs
    else:
        x_ref, y_ref, out_ref = refs

    c = pl.program_id(0)           # chunk (parallel / CORE_PARALLEL axis)
    i = pl.program_id(1)           # row-tile within chunk (reduction axis)
    t = c * tiles_per_chunk + i    # global row-tile index

    @pl.when(i == 0)
    def _init():
        out_ref[...] = jnp.zeros_like(out_ref)

    x = x_ref[...].astype(jnp.float32)
    y = y_ref[...].astype(jnp.float32)
    if with_mask:
        m = m_ref[...].astype(jnp.float32)
        x = x * m
        y = y * m
    loss = _bce_with_logits(x, y)

    need_row_mask = valid_rows_last < tile_rows   # static

    if (not need_row_mask) and (not has_overshoot):
        # Every tile is full and every grid point is real: zero masking cost.
        out_ref[...] += loss
    else:
        @pl.when(t < num_tiles - 1)
        def _full_tile():
            out_ref[...] += loss

        @pl.when(t == num_tiles - 1)
        def _last_tile():
            if need_row_mask:
                rid = lax.broadcasted_iota(jnp.int32, (tile_rows, lanes), 0)
                out_ref[...] += jnp.where(rid < valid_rows_last, loss, 0.0)
            else:
                out_ref[...] += loss
        # t > num_tiles - 1: overshoot tile of an uneven chunk split -> skip.


def _choose_lanes(n):
    for lanes in (512, 256, 128):
        if n % lanes == 0 and n // lanes >= 8:
            return lanes
    return 128   # generic fallback (prefix + small tail handled in wrapper)


def cross_entropy_loss(cls_score, label, mask=None, *,
                       target_tile_bytes=_DEFAULT_TILE_BYTES,
                       num_chunks=1, core_parallel=False):
    """Forward of the reference CrossEntropyLoss module (scalar f32 output).

    Equivalent to:
        if mask is not None:
            cls_score, label = cls_score * mask, label * mask
        F.binary_cross_entropy_with_logits(cls_score, label)   # 'mean'
    weight / avg_factor / reduction_override / ignore_index are unused by the
    reference forward and therefore omitted.

    On v7x pass num_chunks=2, core_parallel=True to split the stream across
    the two TensorCores; the default (1) is right for single-TC v5e / v6e.
    """
    assert cls_score.shape == label.shape
    if mask is not None:
        assert mask.shape == cls_score.shape
        if mask.dtype == jnp.bool_:
            mask = mask.astype(jnp.float32)

    n = int(cls_score.size)
    flats = [cls_score.reshape(-1), label.reshape(-1)]      # free reshapes
    if mask is not None:
        flats.append(mask.reshape(-1))

    lanes = _choose_lanes(n)
    rows = n // lanes

    itemsizes = [int(f.dtype.itemsize) for f in flats]
    sub = max(8, 32 // min(itemsizes))       # sublane multiple: f32 8 / bf16 16 / i8 32

    if rows < sub:
        # Degenerate tiny input (< ~1-4 KiB of elements): not worth a kernel.
        return _bce_sum_jnp(*flats) / n

    n_main = rows * lanes
    tail = n - n_main                        # < lanes elements, handled in wrapper

    # Row-tile size: ~target_tile_bytes for the widest stream, multiple of `sub`.
    tr = max(sub, (target_tile_bytes // (lanes * max(itemsizes)) // sub) * sub)
    tile_rows = min(tr, (rows // sub) * sub)
    num_tiles = pl.cdiv(rows, tile_rows)
    valid_rows_last = rows - (num_tiles - 1) * tile_rows

    chunks = max(1, min(int(num_chunks or 1), num_tiles))
    tiles_per_chunk = pl.cdiv(num_tiles, chunks)
    has_overshoot = chunks * tiles_per_chunk > num_tiles

    if has_overshoot:
        def in_idx(c, i):
            return (jnp.minimum(c * tiles_per_chunk + i, num_tiles - 1), 0)
    else:
        def in_idx(c, i):
            return (c * tiles_per_chunk + i, 0)

    # 2-D lane-dense working views.  If tail == 0 (common case) this is a free
    # reshape of the whole array; only ragged sizes pay one prefix-slice copy.
    main_inputs = [
        (f if tail == 0 else f[:n_main]).reshape(rows, lanes) for f in flats
    ]

    kernel = functools.partial(
        _bce_accum_kernel,
        num_tiles=num_tiles, tiles_per_chunk=tiles_per_chunk,
        tile_rows=tile_rows, lanes=lanes,
        valid_rows_last=valid_rows_last, has_overshoot=has_overshoot,
        with_mask=(mask is not None))

    first_sem = pltpu.CORE_PARALLEL if (core_parallel and chunks > 1) else "parallel"

    partials = pl.pallas_call(
        kernel,
        out_shape=jax.ShapeDtypeStruct((chunks * tile_rows, lanes), jnp.float32),
        grid_spec=pltpu.PrefetchScalarGridSpec(
            num_scalar_prefetch=0,
            grid=(chunks, tiles_per_chunk),
            in_specs=[pl.BlockSpec((tile_rows, lanes), in_idx)
                      for _ in main_inputs],
            out_specs=pl.BlockSpec((tile_rows, lanes), lambda c, i: (c, 0)),
        ),
        compiler_params=pltpu.CompilerParams(
            dimension_semantics=(first_sem, "arbitrary"),
            vmem_limit_bytes=32 * 1024 * 1024),
    )(*main_inputs)

    total = jnp.sum(partials)                 # tiny (<= chunks*tile_rows*lanes) reduce
    if tail:
        tails = [f[n_main:] for f in flats]
        total = total + _bce_sum_jnp(tails[0], tails[1],
                                     tails[2] if mask is not None else None)
    return total / n                          # 'mean' reduction


def _ref_loss(x, y, m=None):
    """Independent plain-jnp reference for BCE-with-logits mean."""
    x = x.astype(jnp.float32)
    y = y.astype(jnp.float32)
    if m is not None:
        m = m.astype(jnp.float32)
        x = x * m
        y = y * m
    per = jnp.maximum(x, 0.0) - x * y + jnp.log1p(jnp.exp(-jnp.abs(x)))
    return jnp.mean(per)


if __name__ == "__main__":
    B, C, H, W = 2, 4, 16, 16

    key = jax.random.PRNGKey(0)
    k1, k2, k3, k4, k5, k6 = jax.random.split(key, 6)

    cls_score = 3.0 * jax.random.normal(k1, (B, C, H, W), dtype=jnp.float32)
    label = jax.random.bernoulli(k2, 0.5, (B, C, H, W)).astype(jnp.float32)
    seg_mask = jax.random.bernoulli(k3, 0.7, (B, C, H, W)).astype(jnp.float32)

    # 1) Default forward path (mask=None): aligned shape, zero-copy layout.
    loss = jax.block_until_ready(cross_entropy_loss(cls_score, label))
    assert loss.shape == ()
    assert jnp.allclose(loss, _ref_loss(cls_score, label), atol=1e-5, rtol=1e-5)

    # 2) Masked path (3 streamed inputs).
    loss_m = jax.block_until_ready(
        cross_entropy_loss(cls_score, label, mask=seg_mask))
    assert jnp.allclose(loss_m, _ref_loss(cls_score, label, seg_mask),
                        atol=1e-5, rtol=1e-5)

    # 3) Ragged shape + chunked grid: exercises the wrapper tail, the masked
    #    partial final row-tile, and the 2-chunk (chunks, tiles) grid.
    xo = 3.0 * jax.random.normal(k4, (3, 5, 17, 19), dtype=jnp.float32)
    yo = jax.random.bernoulli(k5, 0.5, (3, 5, 17, 19)).astype(jnp.float32)
    mo = jax.random.bernoulli(k6, 0.6, (3, 5, 17, 19)).astype(jnp.float32)
    loss_o = jax.block_until_ready(
        cross_entropy_loss(xo, yo, mask=mo, num_chunks=2))
    assert jnp.allclose(loss_o, _ref_loss(xo, yo, mo), atol=1e-5, rtol=1e-5)

    # 4) bf16 inputs: dtype-aware (16, 128) sublane tiling, in-kernel upcast.
    xb = (3.0 * jax.random.normal(k1, (4, 8, 16, 16))).astype(jnp.bfloat16)
    yb = jax.random.bernoulli(k2, 0.5, (4, 8, 16, 16)).astype(jnp.bfloat16)
    loss_b = jax.block_until_ready(cross_entropy_loss(xb, yb))
    assert jnp.allclose(loss_b, _ref_loss(xb, yb), atol=1e-5, rtol=1e-5)

    print("KERNEL_OK")
</pallas_src>

<mosaic_0001>
module attributes {stable_mosaic.version = 11 : i64} {
  func.func @_bce_accum_kernel(%arg0: i32, %arg1: i32, %arg2: memref<8x256xf32, #tpu.memory_space<vmem>>, %arg3: memref<8x256xf32, #tpu.memory_space<vmem>>, %arg4: memref<8x256xf32, #tpu.memory_space<vmem>>) attributes {dimension_semantics = [#tpu.dimension_semantics<parallel>, #tpu.dimension_semantics<arbitrary>], iteration_bounds = array<i64: 1, 1>, scalar_prefetch = 0 : i64, scratch_operands = 0 : i64, tpu.core_type = #tpu.core_type<tc>, window_params = [{transform_indices = @transform_0, window_bounds = array<i64: 8, 256>}, {transform_indices = @transform_1, window_bounds = array<i64: 8, 256>}, {transform_indices = @transform_2, window_bounds = array<i64: 8, 256>}]} {
    %c0_i32 = arith.constant 0 : i32
    %0 = arith.cmpi eq, %arg1, %c0_i32 : i32
    %1 = arith.extui %0 : i1 to i32
    %c0_i32_0 = arith.constant 0 : i32
    %2 = arith.cmpi ne, %1, %c0_i32_0 : i32
    scf.if %2 {
      %cst_9 = arith.constant 0.000000e+00 : f32
      %18 = vector.broadcast %cst_9 : f32 to vector<8x256xf32>
      %c0_10 = arith.constant 0 : index
      %c0_11 = arith.constant 0 : index
      %19 = vector.load %arg4[%c0_10, %c0_11] : memref<8x256xf32, #tpu.memory_space<vmem>>, vector<8x256xf32>
      tpu.vector_store %arg4[%c0_10, %c0_11], %18 {strides = array<i32>} : memref<8x256xf32, #tpu.memory_space<vmem>>, vector<8x256xf32>,
    } else {
    }
    %c0 = arith.constant 0 : index
    %c0_1 = arith.constant 0 : index
    %3 = vector.load %arg2[%c0, %c0_1] : memref<8x256xf32, #tpu.memory_space<vmem>>, vector<8x256xf32>
    %c0_2 = arith.constant 0 : index
    %c0_3 = arith.constant 0 : index
    %4 = vector.load %arg3[%c0_2, %c0_3] : memref<8x256xf32, #tpu.memory_space<vmem>>, vector<8x256xf32>
    %cst = arith.constant 0.000000e+00 : f32
    %5 = vector.broadcast %cst : f32 to vector<8x256xf32>
    %6 = arith.maximumf %3, %5 : vector<8x256xf32>
    %7 = arith.mulf %3, %4 : vector<8x256xf32>
    %8 = arith.subf %6, %7 : vector<8x256xf32>
    %9 = math.absf %3 : vector<8x256xf32>
    %cst_4 = arith.constant 0.000000e+00 : f32
    %10 = vector.broadcast %cst_4 : f32 to vector<8x256xf32>
    %11 = arith.subf %10, %9 : vector<8x256xf32>
    %12 = math.exp %11 : vector<8x256xf32>
    %13 = math.log1p %12 : vector<8x256xf32>
    %14 = arith.addf %8, %13 : vector<8x256xf32>
    %c0_5 = arith.constant 0 : index
    %c0_6 = arith.constant 0 : index
    %15 = vector.load %arg4[%c0_5, %c0_6] : memref<8x256xf32, #tpu.memory_space<vmem>>, vector<8x256xf32>
    %16 = arith.addf %15, %14 : vector<8x256xf32>
    %c0_7 = arith.constant 0 : index
    %c0_8 = arith.constant 0 : index
    %17 = vector.load %arg4[%c0_7, %c0_8] : memref<8x256xf32, #tpu.memory_space<vmem>>, vector<8x256xf32>
    tpu.vector_store %arg4[%c0_7, %c0_8], %16 {strides = array<i32>} : memref<8x256xf32, #tpu.memory_space<vmem>>, vector<8x256xf32>,
    return
  }
  func.func @transform_0(%arg0: i32, %arg1: i32) -> (i32, i32) {
    %c1_i32 = arith.constant 1 : i32
    %0 = arith.muli %arg0, %c1_i32 : i32
    %1 = arith.addi %0, %arg1 : i32
    %c0_i32 = arith.constant 0 : i32
    %c0_i32_0 = arith.constant 0 : i32
    return %1, %c0_i32 : i32, i32
  }
  func.func @transform_1(%arg0: i32, %arg1: i32) -> (i32, i32) {
    %c1_i32 = arith.constant 1 : i32
    %0 = arith.muli %arg0, %c1_i32 : i32
    %1 = arith.addi %0, %arg1 : i32
    %c0_i32 = arith.constant 0 : i32
    %c0_i32_0 = arith.constant 0 : i32
    return %1, %c0_i32 : i32, i32
  }
  func.func @transform_2(%arg0: i32, %arg1: i32) -> (i32, i32) {
    %c0_i32 = arith.constant 0 : i32
    %c0_i32_0 = arith.constant 0 : i32
    return %arg0, %c0_i32 : i32, i32
  }
}

</mosaic_0001>

<bundles_post_ra>
// kernel: tpu_custom_call.1
= control target key start
LH: loop header
LB: loop body
LE: loop exit
PB: predicated region body
PF: predicated region fallthrough
CT: control target
= control target key end

     0   :  { %7 = vsyncpa [#allocation3], 0  ;;  %s250_s0 = inlined_call_operand.hbm [shape: f32[8,256], index: 0, kind: input, shape index: {}]   ;;  %s251_s1 = inlined_call_operand.hbm [shape: f32[8,256], index: 1, kind: input, shape index: {}]   ;;  %s252_s2 = inlined_call_operand.hbm [shape: f32[8,256], index: 2, kind: output, shape index: {}]  }
   0x1   :  { %8 = vsyncpa [#allocation6], 0 }
   0x2   :  { %9 = vsyncpa [#allocation4], 0  ;;  %s196_s9 = smov [#allocation2]   ;;  %s197_s11 = smov [#allocation5]  }
   0x3   :  { %s20_s10 = sshll.u32 %s196_s9, 4  ;;  %s34_s12 = sshll.u32 %s197_s11, 4  ;;  %s21_s10 = int_to_ptr.vmem [resolvable:$true] %s20_s10  ;;  %s35_s12 = int_to_ptr.vmem [resolvable:$true] %s34_s12 }
   0x4   :  { %s124_s15 = scalar_lea.hbm %s250_s0, 256 }
   0x5   :  { %p125_p0 = scmp.ne.s32.totalorder %s250_s0, %s124_s15  ;;  %p128_p1 = scmp.lt.u32.totalorder %s124_s15, %s250_s0 }
   0x7   :  { %p130_p2 = pnand %p128_p1, %p125_p0 }
   0x9   :  { %133 = shalt.err (!%p130_p2)
}
   0xa   :  { %s134_s20 = scalar_lea.vmem %s21_s10, 256  ;;  %p139_p4 = scmp.lt.s32.totalorder %s21_s10, %s21_s10 }
   0xb   :  { %p135_p3 = scmp.ne.s32.totalorder %s21_s10, %s134_s20  ;;  %p140_p5 = scmp.lt.s32.totalorder %s134_s20, %s134_s20 }
   0xd   :  { %p141_p6 = por %p140_p5, %p139_p4 }
   0xf   :  { %p142_p7 = pnand %p141_p6, %p135_p3 }
  0x11   :  { %145 = shalt.err (!%p142_p7)
}
  0x12   :  { %23 = dma.hbm_to_vmem [thread:$0]  %s250_s0, 256, %s21_s10, [#allocation3]  }
  0x13   :  { %s146_s25 = scalar_lea.hbm %s251_s1, 256 }
  0x14   :  { %p147_p8 = scmp.ne.s32.totalorder %s251_s1, %s146_s25  ;;  %p150_p9 = scmp.lt.u32.totalorder %s146_s25, %s251_s1 }
  0x16   :  { %p152_p10 = pnand %p150_p9, %p147_p8 }
  0x18   :  { %155 = shalt.err (!%p152_p10)
}
  0x19   :  { %s156_s30 = scalar_lea.vmem %s35_s12, 256  ;;  %p161_p12 = scmp.lt.s32.totalorder %s35_s12, %s35_s12 }
  0x1a   :  { %p157_p11 = scmp.ne.s32.totalorder %s35_s12, %s156_s30  ;;  %p162_p13 = scmp.lt.s32.totalorder %s156_s30, %s156_s30 }
  0x1c   :  { %p163_p0 = por %p162_p13, %p161_p12 }
  0x1e   :  { %p164_p1 = pnand %p163_p0, %p157_p11 }
  0x20   :  { %167 = shalt.err (!%p164_p1)
}
  0x21   :  { %37 = dma.hbm_to_vmem [thread:$0]  %s251_s1, 256, %s35_s12, [#allocation6]  }
  0x22   :  { %190 = dma.done.wait [#allocation3], 256  }
  0x23   :  { %191 = vsyncadd [#allocation3], 4294967040 }
  0x24   :  { %192 = dma.done.wait [#allocation6], 256  }
  0x25   :  { %193 = vsyncadd [#allocation6], 4294967040  ;;  %v52_v0 = vld [vmem:[#allocation2] sm:$0xff]  ;;  %v53_v1 = vld [vmem:[#allocation2 + $0x8] sm:$0xff]  ;;  %s198_s1 = smov [#allocation7]  }
  0x26   :  { %v62_v2 = vand.u32 2147483647, %v52_v0  ;;  %v63_v3 = vand.u32 2147483647, %v53_v1  ;;  %v54_v14 = vld [vmem:[#allocation5] sm:$0xff]  ;;  %v55_v15 = vld [vmem:[#allocation5 + $0x8] sm:$0xff] }
  0x27   :  { %v56_v17 = vmax.f32 %v52_v0, 0.0  ;;  %v58_v18 = vmul.f32 %v54_v14, %v52_v0  ;;  %v57_v21 = vmax.f32 %v53_v1, 0.0  ;;  %v59_v22 = vmul.f32 %v55_v15, %v53_v1  ;;  %s102_s4 = sshll.u32 %s198_s1, 4  ;;  %s103_s4 = int_to_ptr.vmem [resolvable:$true] %s102_s4 }
  0x28   :  { %v64_v4 = vsub.f32 0.0, %v62_v2  ;;  %v65_v5 = vsub.f32 0.0, %v63_v3  ;;  %s168_s5 = scalar_lea.vmem %s103_s4, 256  ;;  %p173_p3 = scmp.lt.s32.totalorder %s103_s4, %s103_s4 }
  0x29   :  { %v60_v26 = vsub.f32 %v56_v17, %v58_v18  ;;  %v61_v30 = vsub.f32 %v57_v21, %v59_v22  ;;  %p169_p2 = scmp.ne.s32.totalorder %s103_s4, %s168_s5  ;;  %p174_p4 = scmp.lt.s32.totalorder %s168_s5, %s168_s5 }
  0x2a   :  { %v66_v6 = vmul.f32 1.442695, %v64_v4  ;;  %v68_v7 = vmul.f32 1.442695, %v65_v5 }
  0x2b   :  { %p175_p5 = por %p174_p4, %p173_p3 }
  0x2c   :  { %116 = vpow2.f32 %v66_v6 }
  0x2d   :  { %118 = vpow2.f32 %v68_v7  ;;  %p176_p6 = pnand %p175_p5, %p169_p2 }
  0x36   :  { %v117_v8 = vpop.eup %116 }
  0x37   :  { %v119_v9 = vpop.eup %118  ;;  %v70_v10 = vadd.f32 1.0, %v117_v8  ;;  %v73_v12 = vmul.f32 -0.5, %v117_v8  ;;  %v76_v19 = vand.u32 2147483647, %v117_v8 }
  0x38   :  { %v79_v11 = vadd.f32 1.0, %v119_v9  ;;  %v82_v13 = vmul.f32 -0.5, %v119_v9  ;;  %v85_v23 = vand.u32 2147483647, %v119_v9 }
  0x39   :  { %120 = vlog2.f32 %v70_v10  ;;  %v74_v16 = vadd.f32 1.0, %v73_v12  ;;  %vm77_vm0 = vcmp.lt.f32.partialorder %v76_v19, 0.0004427343 }
  0x3a   :  { %122 = vlog2.f32 %v79_v11  ;;  %v83_v20 = vadd.f32 1.0, %v82_v13  ;;  %vm86_vm1 = vcmp.lt.f32.partialorder %v85_v23, 0.0004427343 }
  0x3b   :  { %v75_v24 = vmul.f32 %v117_v8, %v74_v16 }
  0x3c   :  { %v84_v27 = vmul.f32 %v119_v9, %v83_v20 }
  0x43   :  { %v121_v25 = vpop.eup %120 }
  0x44   :  { %v123_v28 = vpop.eup %122  ;;  %v72_v29 = vmul.f32 0.6931472, %v121_v25 }
  0x45   :  { %v81_v31 = vmul.f32 0.6931472, %v123_v28 }
  0x46   :  { %v78_v32 = vsel %vm77_vm0, %v75_v24, %v72_v29 }
  0x47   :  { %v88_v33 = vadd.f32 %v78_v32, %v60_v26  ;;  %v87_v34 = vsel %vm86_vm1, %v84_v27, %v81_v31 }
  0x48   :  { %v89_v35 = vadd.f32 %v87_v34, %v61_v30 }
  0x49   :  { %94 = vst [vmem:[#allocation7] sm:$0xff] %v88_v33 }
  0x4a   :  { %95 = vst [vmem:[#allocation7 + $0x8] sm:$0xff] %v89_v35 }
  0x4b   :  { %179 = shalt.err (!%p176_p6)
}
  0x4c   :  { %s180_s8 = scalar_lea.hbm %s252_s2, 256 }
  0x4d   :  { %p181_p7 = scmp.ne.s32.totalorder %s252_s2, %s180_s8  ;;  %p184_p8 = scmp.lt.u32.totalorder %s180_s8, %s252_s2 }
  0x4f   :  { %p186_p9 = pnand %p184_p8, %p181_p7 }
  0x51   :  { %189 = shalt.err (!%p186_p9)
}
  0x52   :  { %105 = dma.vmem_to_hbm [thread:$0]  %s103_s4, 256, %s252_s2, [#allocation4]  }
  0x53   :  { %194 = dma.done.wait [#allocation4], 256  }
  0x54   :  { %195 = vsyncadd [#allocation4], 4294967040 }
  0x55   :  { %109 = vsyncpa [#allocation3], 1 }
  0x56   :  { %110 = vsyncpa [#allocation6], 1 }
  0x57   :  { %111 = vsyncpa [#allocation4], 1 }

</bundles_post_ra>
